<compile_context>
chip_gen: v7x
topology: tpu7x:2x2x1
jax: 0.10.0
libtpu: 0.0.40
codegen_flags: <defaults>
</compile_context>

<pallas_src>
import numpy as np
import jax
import jax.numpy as jnp
from jax.experimental import pallas as pl
from jax.experimental.pallas import tpu as pltpu


def _bilinear_matrix(in_size: int, out_size: int) -> np.ndarray:
    """1-D interpolation matrix A (out_size, in_size) such that out = A @ in
    reproduces PyTorch bilinear resize with align_corners=False (the
    nn.Upsample default)."""
    a = np.zeros((out_size, in_size), dtype=np.float32)
    scale = in_size / out_size
    for i in range(out_size):
        src = (i + 0.5) * scale - 0.5
        src = max(src, 0.0)
        i0 = min(int(np.floor(src)), in_size - 1)
        frac = src - i0
        i1 = min(i0 + 1, in_size - 1)
        a[i, i0] += 1.0 - frac
        a[i, i1] += frac
    return a


def _u_attention_kernel(w_ref, m_ref, b_ref, o_ref):
    # Bilinear resize (+ flatten + per-row channel tiling) is baked into m_ref,
    # so the whole downsample is one small MXU matmul. w_ref carries 8 identical
    # copies of the flattened weight map (MXU-friendly sublane count).
    w_rows = jnp.dot(w_ref[...], m_ref[...],
                     preferred_element_type=jnp.float32)      # (8, LANE), rows identical
    w_row = w_rows[0:1, :]                                     # (1, LANE)
    # Broadcast the resized weight row over every bottleneck row in the block.
    o_ref[...] = (b_ref[...].astype(jnp.float32) * w_row).astype(o_ref.dtype)


def _pick_lane(total: int, spatial: int) -> int:
    """Widest lane count (multiple of 128, up to 1024) that divides C*spatial;
    falls back to `spatial` (full-dim block, still legal) otherwise."""
    for cand in (1024, 512, 256, 128):
        if total % cand == 0:
            return cand
    return spatial


def _pick_tile_rows(rows: int, lane: int, budget_bytes: int = 512 * 1024) -> int:
    """Largest divisor of `rows` that is a multiple of 8 and fits the byte
    budget; returns `rows` itself if it already fits or no such divisor exists
    (full-dim row blocks are always legal)."""
    budget_rows = max(1, budget_bytes // (lane * 4))
    if rows <= budget_rows:
        return rows
    cand = (budget_rows // 8) * 8
    while cand >= 8:
        if rows % cand == 0:
            return cand
        cand -= 8
    return rows


def u_attention(weights, bottleneck):
    """weights: (1, 1, Hin, Win); bottleneck: (1, C, 8, 8).
    Returns bilinear_resize(weights, (8, 8)) broadcast over C, times bottleneck."""
    wb, wc, h_in, w_in = weights.shape
    assert wb == 1 and wc == 1, "U_Attention expects a single-channel weight map"
    nb, chan, h_b, w_b = bottleneck.shape
    assert nb == 1 and (h_b, w_b) == (8, 8), "bottleneck must be (1, C, 8, 8)"

    spatial = h_b * w_b                               # 64
    total = chan * spatial
    lane = _pick_lane(total, spatial)                 # lane-dense layout when possible
    reps = lane // spatial                            # channels packed per row
    rows = total // lane

    # Precompute the resize-as-matrix (trace-time constants; PyTorch semantics).
    a_h = _bilinear_matrix(h_in, h_b)                 # (8, Hin)
    a_w = _bilinear_matrix(w_in, w_b)                 # (8, Win)
    k = np.kron(a_h, a_w)                             # (64, Hin*Win): out_flat = K @ in_flat
    m = np.tile(k.T, (1, reps))                       # (Hin*Win, LANE)
    m = jnp.asarray(m, dtype=jnp.float32)

    w_flat = weights.reshape(1, h_in * w_in).astype(jnp.float32)
    w_rows = jnp.broadcast_to(w_flat, (8, h_in * w_in))
    b_flat = bottleneck.reshape(rows, lane)

    tile_rows = _pick_tile_rows(rows, lane)
    grid = (pl.cdiv(rows, tile_rows),)

    out = pl.pallas_call(
        _u_attention_kernel,
        out_shape=jax.ShapeDtypeStruct((rows, lane), bottleneck.dtype),
        grid_spec=pltpu.PrefetchScalarGridSpec(
            num_scalar_prefetch=0,
            grid=grid,
            in_specs=[
                pl.BlockSpec((8, h_in * w_in), lambda i: (0, 0)),      # weight map copies
                pl.BlockSpec((h_in * w_in, lane), lambda i: (0, 0)),   # interp matrix
                pl.BlockSpec((tile_rows, lane), lambda i: (i, 0)),     # bottleneck tile
            ],
            out_specs=pl.BlockSpec((tile_rows, lane), lambda i: (i, 0)),
        ),
        compiler_params=pltpu.CompilerParams(
            dimension_semantics=("parallel",),
        ),
    )(w_rows, m, b_flat)

    return out.reshape(1, chan, h_b, w_b)


if __name__ == "__main__":
    key = jax.random.PRNGKey(0)
    k1, k2 = jax.random.split(key)

    bottleneck_dim = 32
    weights = jax.random.uniform(k1, (1, 1, 16, 16), dtype=jnp.float32)
    bottleneck = jax.random.normal(k2, (1, bottleneck_dim, 8, 8), dtype=jnp.float32)

    out = u_attention(weights, bottleneck)
    out = jax.block_until_ready(out)

    # Pure reference with the same PyTorch-style (align_corners=False) bilinear
    # semantics, computed on host in numpy for full precision.
    a_h = _bilinear_matrix(16, 8)
    a_w = _bilinear_matrix(16, 8)
    w_small = a_h @ np.asarray(weights[0, 0]) @ a_w.T          # (8, 8)
    ref = jnp.asarray(w_small)[None, None, :, :] * bottleneck  # broadcast over channels

    assert out.shape == bottleneck.shape and out.dtype == bottleneck.dtype
    assert jnp.allclose(out, ref, atol=1e-5, rtol=1e-4)

    print("KERNEL_OK")
</pallas_src>

<mosaic_0001>
module attributes {stable_mosaic.version = 11 : i64} {
  func.func @_u_attention_kernel(%arg0: i32, %arg1: memref<8x256xf32, #tpu.memory_space<vmem>>, %arg2: memref<256x1024xf32, #tpu.memory_space<vmem>>, %arg3: memref<2x1024xf32, #tpu.memory_space<vmem>>, %arg4: memref<2x1024xf32, #tpu.memory_space<vmem>>) attributes {dimension_semantics = [#tpu.dimension_semantics<parallel>], iteration_bounds = array<i64: 1>, scalar_prefetch = 0 : i64, scratch_operands = 0 : i64, tpu.core_type = #tpu.core_type<tc>, window_params = [{pipeline_mode = #tpu.pipeline_mode<synchronous>, transform_indices = @transform_0, window_bounds = array<i64: 8, 256>}, {pipeline_mode = #tpu.pipeline_mode<synchronous>, transform_indices = @transform_1, window_bounds = array<i64: 256, 1024>}, {transform_indices = @transform_2, window_bounds = array<i64: 2, 1024>}, {transform_indices = @transform_3, window_bounds = array<i64: 2, 1024>}]} {
    %c0 = arith.constant 0 : index
    %c0_0 = arith.constant 0 : index
    %0 = vector.load %arg1[%c0, %c0_0] : memref<8x256xf32, #tpu.memory_space<vmem>>, vector<8x256xf32>
    %c0_1 = arith.constant 0 : index
    %c0_2 = arith.constant 0 : index
    %1 = vector.load %arg2[%c0_1, %c0_2] : memref<256x1024xf32, #tpu.memory_space<vmem>>, vector<256x1024xf32>
    %cst = arith.constant dense<0.000000e+00> : vector<8x1024xf32>
    %2 = tpu.matmul %0, %1, %cst {dimension_numbers = #tpu.dot_dimension_numbers<[1], [0], [0], [1], [0, 0, 1, 1], [], []>} : vector<8x256xf32>, vector<256x1024xf32>, vector<8x1024xf32> -> vector<8x1024xf32>
    %3 = vector.extract_strided_slice %2 {offsets = [0, 0], sizes = [1, 1024], strides = [1, 1]} : vector<8x1024xf32> to vector<1x1024xf32>
    %c0_3 = arith.constant 0 : index
    %c0_4 = arith.constant 0 : index
    %4 = vector.load %arg3[%c0_3, %c0_4] : memref<2x1024xf32, #tpu.memory_space<vmem>>, vector<2x1024xf32>
    %5 = vector.broadcast %3 : vector<1x1024xf32> to vector<2x1024xf32>
    %6 = arith.mulf %4, %5 : vector<2x1024xf32>
    %c0_5 = arith.constant 0 : index
    %c0_6 = arith.constant 0 : index
    %7 = vector.load %arg4[%c0_5, %c0_6] : memref<2x1024xf32, #tpu.memory_space<vmem>>, vector<2x1024xf32>
    tpu.vector_store %arg4[%c0_5, %c0_6], %6 {strides = array<i32>} : memref<2x1024xf32, #tpu.memory_space<vmem>>, vector<2x1024xf32>,
    return
  }
  func.func @transform_0(%arg0: i32) -> (i32, i32) {
    %c0_i32 = arith.constant 0 : i32
    %c0_i32_0 = arith.constant 0 : i32
    %c0_i32_1 = arith.constant 0 : i32
    return %c0_i32, %c0_i32_0 : i32, i32
  }
  func.func @transform_1(%arg0: i32) -> (i32, i32) {
    %c0_i32 = arith.constant 0 : i32
    %c0_i32_0 = arith.constant 0 : i32
    %c0_i32_1 = arith.constant 0 : i32
    return %c0_i32, %c0_i32_0 : i32, i32
  }
  func.func @transform_2(%arg0: i32) -> (i32, i32) {
    %c0_i32 = arith.constant 0 : i32
    %c0_i32_0 = arith.constant 0 : i32
    return %arg0, %c0_i32 : i32, i32
  }
  func.func @transform_3(%arg0: i32) -> (i32, i32) {
    %c0_i32 = arith.constant 0 : i32
    %c0_i32_0 = arith.constant 0 : i32
    return %arg0, %c0_i32 : i32, i32
  }
}

</mosaic_0001>

<bundles_post_ra>
// kernel: tpu_custom_call.1
= control target key start
LH: loop header
LB: loop body
LE: loop exit
PB: predicated region body
PF: predicated region fallthrough
CT: control target
= control target key end

     0   :  { %8 = vsyncpa [#allocation3], 0  ;;  %s1136_s0 = inlined_call_operand.hbm [shape: f32[8,256], index: 0, kind: input, shape index: {}]   ;;  %s1137_s1 = inlined_call_operand.hbm [shape: f32[256,1024], index: 1, kind: input, shape index: {}]   ;;  %s1138_s2 = inlined_call_operand.hbm [shape: f32[2,1024], index: 2, kind: input, shape index: {}]   ;;  %s1139_s3 = inlined_call_operand.hbm [shape: f32[2,1024], index: 3, kind: output, shape index: {}]  }
   0x1   :  { %9 = vsyncpa [#allocation6], 0 }
   0x2   :  { %10 = vsyncpa [#allocation4], 0  ;;  %s1049_s12 = smov [#allocation5]   ;;  %s955_s16 = scalar_lea.hbm %s1137_s1, 32768 }
   0x3   :  { %s26_s13 = sshll.u32 %s1049_s12, 4  ;;  %p956_p0 = scmp.ne.s32.totalorder %s1137_s1, %s955_s16  ;;  %s27_s13 = int_to_ptr.vmem [resolvable:$true] %s26_s13 }
   0x4   :  { %p959_p1 = scmp.lt.u32.totalorder %s955_s16, %s1137_s1 }
   0x6   :  { %p961_p2 = pnand %p959_p1, %p956_p0 }
   0x8   :  { %964 = shalt.err (!%p961_p2)
}
   0x9   :  { %s965_s21 = scalar_lea.vmem %s27_s13, 32768  ;;  %p970_p4 = scmp.lt.s32.totalorder %s27_s13, %s27_s13 }
   0xa   :  { %p966_p3 = scmp.ne.s32.totalorder %s27_s13, %s965_s21  ;;  %p971_p5 = scmp.lt.s32.totalorder %s965_s21, %s965_s21 }
   0xc   :  { %p972_p6 = por %p971_p5, %p970_p4 }
   0xe   :  { %p973_p7 = pnand %p972_p6, %p966_p3 }
  0x10   :  { %976 = shalt.err (!%p973_p7)
}
  0x11   :  { %s1050_s22 = smov 1024   ;;  %s1051_s23 = smov 64  }
  0x12   :  { %32 = dma.hbm_to_vmem [thread:$0]  %s1137_s1, 32768, %s27_s13, [#allocation6], %s1050_s22, %s1050_s22, %s1051_s23  }
  0x13   :  { %s1052_s26 = smov [#allocation2]   ;;  %s1053_s28 = smov [#allocation7]  }
  0x14   :  { %s17_s27 = sshll.u32 %s1052_s26, 4  ;;  %s39_s29 = sshll.u32 %s1053_s28, 4  ;;  %s18_s27 = int_to_ptr.vmem [resolvable:$true] %s17_s27  ;;  %s40_s29 = int_to_ptr.vmem [resolvable:$true] %s39_s29 }
  0x15   :  { %s977_s5 = scalar_lea.hbm %s1136_s0, 256 }
  0x16   :  { %p978_p8 = scmp.ne.s32.totalorder %s1136_s0, %s977_s5  ;;  %p981_p9 = scmp.lt.u32.totalorder %s977_s5, %s1136_s0 }
  0x18   :  { %p983_p10 = pnand %p981_p9, %p978_p8 }
  0x1a   :  { %986 = shalt.err (!%p983_p10)
}
  0x1b   :  { %s987_s1 = scalar_lea.vmem %s18_s27, 256  ;;  %p992_p12 = scmp.lt.s32.totalorder %s18_s27, %s18_s27 }
  0x1c   :  { %p988_p11 = scmp.ne.s32.totalorder %s18_s27, %s987_s1  ;;  %p993_p13 = scmp.lt.s32.totalorder %s987_s1, %s987_s1 }
  0x1e   :  { %p994_p0 = por %p993_p13, %p992_p12 }
  0x20   :  { %p995_p1 = pnand %p994_p0, %p988_p11 }
  0x22   :  { %998 = shalt.err (!%p995_p1)
}
  0x23   :  { %20 = dma.hbm_to_vmem [thread:$0]  %s1136_s0, 256, %s18_s27, [#allocation3]  }
  0x24   :  { %s999_s14 = scalar_lea.hbm %s1138_s2, 256 }
  0x25   :  { %p1000_p2 = scmp.ne.s32.totalorder %s1138_s2, %s999_s14  ;;  %p1003_p3 = scmp.lt.u32.totalorder %s999_s14, %s1138_s2 }
  0x27   :  { %p1005_p4 = pnand %p1003_p3, %p1000_p2 }
  0x29   :  { %1008 = shalt.err (!%p1005_p4)
}
  0x2a   :  { %s1009_s19 = scalar_lea.vmem %s40_s29, 256  ;;  %p1014_p6 = scmp.lt.s32.totalorder %s40_s29, %s40_s29 }
  0x2b   :  { %p1010_p5 = scmp.ne.s32.totalorder %s40_s29, %s1009_s19  ;;  %p1015_p7 = scmp.lt.s32.totalorder %s1009_s19, %s1009_s19 }
  0x2d   :  { %p1016_p8 = por %p1015_p7, %p1014_p6 }
  0x2f   :  { %p1017_p9 = pnand %p1016_p8, %p1010_p5 }
  0x31   :  { %1020 = shalt.err (!%p1017_p9)
}
  0x32   :  { %42 = dma.hbm_to_vmem [thread:$0]  %s1138_s2, 256, %s40_s29, [#allocation6]  }
  0x33   :  { %1043 = dma.done.wait [#allocation3], 256  }
  0x34   :  { %1044 = vsyncadd [#allocation3], 4294967040 }
  0x35   :  { %1045 = dma.done.wait [#allocation6], 33024  }
  0x36   :  { %1046 = vsyncadd [#allocation6], 4294934272  ;;  %v55_v0 = vld [vmem:[#allocation5 + $0x8] sm:$0xff]  ;;  %v57_v2 = vld [vmem:[#allocation5 + $0x18] sm:$0xff]  ;;  %s1055_s2 = smov [#allocation8]  }
  0x37   :  { %v63_v1 = vld [vmem:[#allocation5 + $0x48] sm:$0xff]  ;;  %v65_v4 = vld [vmem:[#allocation5 + $0x58] sm:$0xff]  ;;  %v54_v5 = vld [vmem:[#allocation5] sm:$0xff]  ;;  %s682_s21 = sshll.u32 %s1055_s2, 4  ;;  %s683_s21 = int_to_ptr.vmem [resolvable:$true] %s682_s21 }
  0x38   :  { %v692_v3 = vpack.c.bf16 %v63_v1, %v55_v0  ;;  %v62_v6 = vld [vmem:[#allocation5 + $0x40] sm:$0xff]  ;;  %v756_v7 = vpack.c.bf16 %v65_v4, %v57_v2  ;;  %v56_v9 = vld [vmem:[#allocation5 + $0x10] sm:$0xff]  ;;  %v71_v11 = vld [vmem:[#allocation5 + $0x88] sm:$0xff]  ;;  %s1021_s22 = scalar_lea.vmem %s683_s21, 256  ;;  %p1026_p11 = scmp.lt.s32.totalorder %s683_s21, %s683_s21 }
  0x39   :  { %v694_v8 = vpack.c.bf16 %v62_v6, %v54_v5  ;;  %v64_v10 = vld [vmem:[#allocation5 + $0x50] sm:$0xff]  ;;  %v79_v13 = vld [vmem:[#allocation5 + $0xc8] sm:$0xff]  ;;  %v73_v14 = vld [vmem:[#allocation5 + $0x98] sm:$0xff]  ;;  %p1022_p10 = scmp.ne.s32.totalorder %s683_s21, %s1021_s22  ;;  %p1027_p12 = scmp.lt.s32.totalorder %s1021_s22, %s1021_s22 }
  0x3a   :  { %693 = vmatprep.subr.bf16.mxu0 %v692_v3  ;;  %v758_v12 = vpack.c.bf16 %v64_v10, %v56_v9  ;;  %v81_v15 = vld [vmem:[#allocation5 + $0xd8] sm:$0xff]  ;;  %757 = vmatprep.subr.bf16.mxu1 %v756_v7  ;;  %v696_v16 = vpack.c.bf16 %v79_v13, %v71_v11  ;;  %v70_v18 = vld [vmem:[#allocation5 + $0x80] sm:$0xff]  ;;  %v72_v20 = vld [vmem:[#allocation5 + $0x90] sm:$0xff] }
  0x3b   :  { %695 = vmatpush1.bf16.msra.mxu0 %v694_v8  ;;  %v760_v17 = vpack.c.bf16 %v81_v15, %v73_v14  ;;  %v78_v19 = vld [vmem:[#allocation5 + $0xc0] sm:$0xff]  ;;  %v80_v22 = vld [vmem:[#allocation5 + $0xd0] sm:$0xff]  ;;  %v87_v23 = vld [vmem:[#allocation5 + $0x108] sm:$0xff]  ;;  %p1028_p13 = por %p1027_p12, %p1026_p11 }
  0x3c   :  { %759 = vmatpush1.bf16.msra.mxu1 %v758_v12  ;;  %v698_v21 = vpack.c.bf16 %v78_v19, %v70_v18  ;;  %v95_v24 = vld [vmem:[#allocation5 + $0x148] sm:$0xff]  ;;  %697 = vmatprep.subr.bf16.mxu0 %v696_v16  ;;  %v762_v25 = vpack.c.bf16 %v80_v22, %v72_v20  ;;  %v89_v27 = vld [vmem:[#allocation5 + $0x118] sm:$0xff]  ;;  %v86_v29 = vld [vmem:[#allocation5 + $0x100] sm:$0xff] }
  0x3d   :  { %761 = vmatprep.subr.bf16.mxu1 %v760_v17  ;;  %v700_v26 = vpack.c.bf16 %v95_v24, %v87_v23  ;;  %v97_v28 = vld [vmem:[#allocation5 + $0x158] sm:$0xff]  ;;  %v94_v31 = vld [vmem:[#allocation5 + $0x140] sm:$0xff]  ;;  %v88_v32 = vld [vmem:[#allocation5 + $0x110] sm:$0xff]  ;;  %p1029_p0 = pnand %p1028_p13, %p1022_p10 }
  0x3e   :  { %v764_v30 = vpack.c.bf16 %v97_v28, %v89_v27  ;;  %v96_v33 = vld [vmem:[#allocation5 + $0x150] sm:$0xff]  ;;  %v702_v34 = vpack.c.bf16 %v94_v31, %v86_v29  ;;  %v103_v35 = vld [vmem:[#allocation5 + $0x188] sm:$0xff]  ;;  %v105_v37 = vld [vmem:[#allocation5 + $0x198] sm:$0xff] }
  0x3f   :  { %699 = vmatpush1.bf16.msra.mxu0 %v698_v21  ;;  %v111_v36 = vld [vmem:[#allocation5 + $0x1c8] sm:$0xff]  ;;  %v766_v38 = vpack.c.bf16 %v96_v33, %v88_v32  ;;  %v113_v40 = vld [vmem:[#allocation5 + $0x1d8] sm:$0xff]  ;;  %v102_v41 = vld [vmem:[#allocation5 + $0x180] sm:$0xff] }
  0x40   :  { %763 = vmatpush1.bf16.msra.mxu1 %v762_v25  ;;  %701 = vmatprep.subr.bf16.mxu0 %v700_v26  ;;  %v704_v39 = vpack.c.bf16 %v111_v36, %v103_v35  ;;  %v110_v42 = vld [vmem:[#allocation5 + $0x1c0] sm:$0xff]  ;;  %v768_v43 = vpack.c.bf16 %v113_v40, %v105_v37  ;;  %v104_v44 = vld [vmem:[#allocation5 + $0x190] sm:$0xff]  ;;  %v119_v46 = vld [vmem:[#allocation5 + $0x208] sm:$0xff] }
  0x41   :  { %765 = vmatprep.subr.bf16.mxu1 %v764_v30  ;;  %v112_v45 = vld [vmem:[#allocation5 + $0x1d0] sm:$0xff]  ;;  %v127_v47 = vld [vmem:[#allocation5 + $0x248] sm:$0xff]  ;;  %v121_v48 = vld [vmem:[#allocation5 + $0x218] sm:$0xff]  ;;  %v706_v50 = vpack.c.bf16 %v110_v42, %v102_v41 }
  0x42   :  { %v129_v49 = vld [vmem:[#allocation5 + $0x258] sm:$0xff]  ;;  %v770_v51 = vpack.c.bf16 %v112_v45, %v104_v44  ;;  %v708_v52 = vpack.c.bf16 %v127_v47, %v119_v46  ;;  %v118_v53 = vld [vmem:[#allocation5 + $0x200] sm:$0xff]  ;;  %v120_v55 = vld [vmem:[#allocation5 + $0x210] sm:$0xff] }
  0x43   :  { %703 = vmatpush1.bf16.msra.mxu0 %v702_v34  ;;  %v126_v54 = vld [vmem:[#allocation5 + $0x240] sm:$0xff]  ;;  %v772_v56 = vpack.c.bf16 %v129_v49, %v121_v48  ;;  %v128_v57 = vld [vmem:[#allocation5 + $0x250] sm:$0xff]  ;;  %v135_v58 = vld [vmem:[#allocation5 + $0x288] sm:$0xff] }
  0x44   :  { %767 = vmatpush1.bf16.msra.mxu1 %v766_v38  ;;  %705 = vmatprep.subr.bf16.mxu0 %v704_v39  ;;  %v143_v59 = vld [vmem:[#allocation5 + $0x2c8] sm:$0xff]  ;;  %v137_v60 = vld [vmem:[#allocation5 + $0x298] sm:$0xff]  ;;  %v710_v62 = vpack.c.bf16 %v126_v54, %v118_v53  ;;  %v774_v63 = vpack.c.bf16 %v128_v57, %v120_v55  ;;  %v134_v1 = vld [vmem:[#allocation5 + $0x280] sm:$0xff] }
  0x45   :  { %769 = vmatprep.subr.bf16.mxu1 %v768_v43  ;;  %v145_v61 = vld [vmem:[#allocation5 + $0x2d8] sm:$0xff]  ;;  %v712_v0 = vpack.c.bf16 %v143_v59, %v135_v58  ;;  %v142_v2 = vld [vmem:[#allocation5 + $0x2c0] sm:$0xff]  ;;  %v136_v3 = vld [vmem:[#allocation5 + $0x290] sm:$0xff] }
  0x46   :  { %v776_v4 = vpack.c.bf16 %v145_v61, %v137_v60  ;;  %v144_v5 = vld [vmem:[#allocation5 + $0x2d0] sm:$0xff]  ;;  %v151_v6 = vld [vmem:[#allocation5 + $0x308] sm:$0xff]  ;;  %v153_v8 = vld [vmem:[#allocation5 + $0x318] sm:$0xff]  ;;  %v714_v10 = vpack.c.bf16 %v142_v2, %v134_v1 }
  0x47   :  { %707 = vmatpush1.bf16.msra.mxu0 %v706_v50  ;;  %v159_v7 = vld [vmem:[#allocation5 + $0x348] sm:$0xff]  ;;  %v161_v9 = vld [vmem:[#allocation5 + $0x358] sm:$0xff]  ;;  %v778_v11 = vpack.c.bf16 %v144_v5, %v136_v3  ;;  %v150_v13 = vld [vmem:[#allocation5 + $0x300] sm:$0xff] }
  0x48   :  { %771 = vmatpush1.bf16.msra.mxu1 %v770_v51  ;;  %709 = vmatprep.subr.bf16.mxu0 %v708_v52  ;;  %v716_v12 = vpack.c.bf16 %v159_v7, %v151_v6  ;;  %v158_v14 = vld [vmem:[#allocation5 + $0x340] sm:$0xff]  ;;  %v152_v15 = vld [vmem:[#allocation5 + $0x310] sm:$0xff]  ;;  %v780_v16 = vpack.c.bf16 %v161_v9, %v153_v8  ;;  %v167_v18 = vld [vmem:[#allocation5 + $0x388] sm:$0xff] }
  0x49   :  { %773 = vmatprep.subr.bf16.mxu1 %v772_v56  ;;  %v160_v17 = vld [vmem:[#allocation5 + $0x350] sm:$0xff]  ;;  %v175_v19 = vld [vmem:[#allocation5 + $0x3c8] sm:$0xff]  ;;  %v169_v20 = vld [vmem:[#allocation5 + $0x398] sm:$0xff]  ;;  %v718_v22 = vpack.c.bf16 %v158_v14, %v150_v13 }
  0x4a   :  { %v177_v21 = vld [vmem:[#allocation5 + $0x3d8] sm:$0xff]  ;;  %v782_v23 = vpack.c.bf16 %v160_v17, %v152_v15  ;;  %v720_v24 = vpack.c.bf16 %v175_v19, %v167_v18  ;;  %v166_v25 = vld [vmem:[#allocation5 + $0x380] sm:$0xff]  ;;  %v168_v27 = vld [vmem:[#allocation5 + $0x390] sm:$0xff] }
  0x4b   :  { %711 = vmatpush1.bf16.msra.mxu0 %v710_v62  ;;  %v174_v26 = vld [vmem:[#allocation5 + $0x3c0] sm:$0xff]  ;;  %v784_v28 = vpack.c.bf16 %v177_v21, %v169_v20  ;;  %v176_v29 = vld [vmem:[#allocation5 + $0x3d0] sm:$0xff]  ;;  %v183_v30 = vld [vmem:[#allocation5 + $0x408] sm:$0xff] }
  0x4c   :  { %775 = vmatpush1.bf16.msra.mxu1 %v774_v63  ;;  %713 = vmatprep.subr.bf16.mxu0 %v712_v0  ;;  %v191_v31 = vld [vmem:[#allocation5 + $0x448] sm:$0xff]  ;;  %v185_v32 = vld [vmem:[#allocation5 + $0x418] sm:$0xff]  ;;  %v722_v34 = vpack.c.bf16 %v174_v26, %v166_v25  ;;  %v786_v35 = vpack.c.bf16 %v176_v29, %v168_v27  ;;  %v182_v37 = vld [vmem:[#allocation5 + $0x400] sm:$0xff] }
  0x4d   :  { %777 = vmatprep.subr.bf16.mxu1 %v776_v4  ;;  %v193_v33 = vld [vmem:[#allocation5 + $0x458] sm:$0xff]  ;;  %v724_v36 = vpack.c.bf16 %v191_v31, %v183_v30  ;;  %v190_v38 = vld [vmem:[#allocation5 + $0x440] sm:$0xff]  ;;  %v184_v39 = vld [vmem:[#allocation5 + $0x410] sm:$0xff] }
  0x4e   :  { %v788_v40 = vpack.c.bf16 %v193_v33, %v185_v32  ;;  %v192_v41 = vld [vmem:[#allocation5 + $0x450] sm:$0xff]  ;;  %v199_v42 = vld [vmem:[#allocation5 + $0x488] sm:$0xff]  ;;  %v201_v44 = vld [vmem:[#allocation5 + $0x498] sm:$0xff]  ;;  %v726_v46 = vpack.c.bf16 %v190_v38, %v182_v37 }
  0x4f   :  { %715 = vmatpush1.bf16.msra.mxu0 %v714_v10  ;;  %v207_v43 = vld [vmem:[#allocation5 + $0x4c8] sm:$0xff]  ;;  %v209_v45 = vld [vmem:[#allocation5 + $0x4d8] sm:$0xff]  ;;  %v790_v47 = vpack.c.bf16 %v192_v41, %v184_v39  ;;  %v198_v49 = vld [vmem:[#allocation5 + $0x480] sm:$0xff] }
  0x50   :  { %779 = vmatpush1.bf16.msra.mxu1 %v778_v11  ;;  %717 = vmatprep.subr.bf16.mxu0 %v716_v12  ;;  %v728_v48 = vpack.c.bf16 %v207_v43, %v199_v42  ;;  %v206_v50 = vld [vmem:[#allocation5 + $0x4c0] sm:$0xff]  ;;  %v200_v51 = vld [vmem:[#allocation5 + $0x490] sm:$0xff]  ;;  %v792_v52 = vpack.c.bf16 %v209_v45, %v201_v44  ;;  %v215_v54 = vld [vmem:[#allocation5 + $0x508] sm:$0xff] }
  0x51   :  { %781 = vmatprep.subr.bf16.mxu1 %v780_v16  ;;  %v208_v53 = vld [vmem:[#allocation5 + $0x4d0] sm:$0xff]  ;;  %v223_v55 = vld [vmem:[#allocation5 + $0x548] sm:$0xff]  ;;  %v217_v56 = vld [vmem:[#allocation5 + $0x518] sm:$0xff]  ;;  %v730_v58 = vpack.c.bf16 %v206_v50, %v198_v49 }
  0x52   :  { %v225_v57 = vld [vmem:[#allocation5 + $0x558] sm:$0xff]  ;;  %v794_v59 = vpack.c.bf16 %v208_v53, %v200_v51  ;;  %v732_v60 = vpack.c.bf16 %v223_v55, %v215_v54  ;;  %v214_v61 = vld [vmem:[#allocation5 + $0x500] sm:$0xff]  ;;  %v216_v63 = vld [vmem:[#allocation5 + $0x510] sm:$0xff] }
  0x53   :  { %719 = vmatpush1.bf16.msra.mxu0 %v718_v22  ;;  %v222_v62 = vld [vmem:[#allocation5 + $0x540] sm:$0xff]  ;;  %v796_v0 = vpack.c.bf16 %v225_v57, %v217_v56  ;;  %v224_v1 = vld [vmem:[#allocation5 + $0x550] sm:$0xff]  ;;  %v231_v2 = vld [vmem:[#allocation5 + $0x588] sm:$0xff] }
  0x54   :  { %783 = vmatpush1.bf16.msra.mxu1 %v782_v23  ;;  %721 = vmatprep.subr.bf16.mxu0 %v720_v24  ;;  %v239_v3 = vld [vmem:[#allocation5 + $0x5c8] sm:$0xff]  ;;  %v233_v4 = vld [vmem:[#allocation5 + $0x598] sm:$0xff]  ;;  %v734_v6 = vpack.c.bf16 %v222_v62, %v214_v61  ;;  %v230_v7 = vld [vmem:[#allocation5 + $0x580] sm:$0xff]  ;;  %v798_v8 = vpack.c.bf16 %v224_v1, %v216_v63 }
  0x55   :  { %785 = vmatprep.subr.bf16.mxu1 %v784_v28  ;;  %v241_v5 = vld [vmem:[#allocation5 + $0x5d8] sm:$0xff]  ;;  %v736_v9 = vpack.c.bf16 %v239_v3, %v231_v2  ;;  %v238_v10 = vld [vmem:[#allocation5 + $0x5c0] sm:$0xff]  ;;  %v232_v11 = vld [vmem:[#allocation5 + $0x590] sm:$0xff] }
  0x56   :  { %v240_v12 = vld [vmem:[#allocation5 + $0x5d0] sm:$0xff]  ;;  %v800_v13 = vpack.c.bf16 %v241_v5, %v233_v4  ;;  %v247_v14 = vld [vmem:[#allocation5 + $0x608] sm:$0xff]  ;;  %v1112_v16 = vld [vmem:[#allocation2 + $0x8] sm:$0xff]  ;;  %v738_v19 = vpack.c.bf16 %v238_v10, %v230_v7 }
  0x57   :  { %723 = vmatpush1.bf16.msra.mxu0 %v722_v34  ;;  %v255_v15 = vld [vmem:[#allocation5 + $0x648] sm:$0xff]  ;;  %v249_v17 = vld [vmem:[#allocation5 + $0x618] sm:$0xff]  ;;  %374 = vmatprep.mubr.f32.mxu0 %v1112_v16  ;;  %v802_v20 = vpack.c.bf16 %v240_v12, %v232_v11  ;;  %v246_v22 = vld [vmem:[#allocation5 + $0x600] sm:$0xff] }
  0x58   :  { %787 = vmatpush1.bf16.msra.mxu1 %v786_v35  ;;  %725 = vmatprep.subr.bf16.mxu0 %v724_v36  ;;  %v257_v18 = vld [vmem:[#allocation5 + $0x658] sm:$0xff]  ;;  %v740_v21 = vpack.c.bf16 %v255_v15, %v247_v14  ;;  %v254_v23 = vld [vmem:[#allocation5 + $0x640] sm:$0xff]  ;;  %v248_v24 = vld [vmem:[#allocation5 + $0x610] sm:$0xff] }
  0x59   :  { %789 = vmatprep.subr.bf16.mxu1 %v788_v40  ;;  %445 = vmatprep.mubr.f32.mxu1 %v1112_v16  ;;  %v804_v25 = vpack.c.bf16 %v257_v18, %v249_v17  ;;  %v256_v26 = vld [vmem:[#allocation5 + $0x650] sm:$0xff]  ;;  %v263_v27 = vld [vmem:[#allocation5 + $0x688] sm:$0xff]  ;;  %v265_v29 = vld [vmem:[#allocation5 + $0x698] sm:$0xff]  ;;  %v742_v31 = vpack.c.bf16 %v254_v23, %v246_v22 }
  0x5a   :  { %v271_v28 = vld [vmem:[#allocation5 + $0x6c8] sm:$0xff]  ;;  %v273_v30 = vld [vmem:[#allocation5 + $0x6d8] sm:$0xff]  ;;  %v806_v32 = vpack.c.bf16 %v256_v26, %v248_v24  ;;  %v262_v34 = vld [vmem:[#allocation5 + $0x680] sm:$0xff] }
  0x5b   :  { %727 = vmatpush1.bf16.msra.mxu0 %v726_v46  ;;  %v744_v33 = vpack.c.bf16 %v271_v28, %v263_v27  ;;  %v270_v35 = vld [vmem:[#allocation5 + $0x6c0] sm:$0xff]  ;;  %v264_v36 = vld [vmem:[#allocation5 + $0x690] sm:$0xff]  ;;  %v808_v37 = vpack.c.bf16 %v273_v30, %v265_v29  ;;  %v279_v39 = vld [vmem:[#allocation5 + $0x708] sm:$0xff] }
  0x5c   :  { %791 = vmatpush1.bf16.msra.mxu1 %v790_v47  ;;  %729 = vmatprep.subr.bf16.mxu0 %v728_v48  ;;  %v272_v38 = vld [vmem:[#allocation5 + $0x6d0] sm:$0xff]  ;;  %v287_v40 = vld [vmem:[#allocation5 + $0x748] sm:$0xff]  ;;  %v281_v41 = vld [vmem:[#allocation5 + $0x718] sm:$0xff]  ;;  %v746_v43 = vpack.c.bf16 %v270_v35, %v262_v34 }
  0x5d   :  { %793 = vmatprep.subr.bf16.mxu1 %v792_v52  ;;  %v289_v42 = vld [vmem:[#allocation5 + $0x758] sm:$0xff]  ;;  %v810_v44 = vpack.c.bf16 %v272_v38, %v264_v36  ;;  %v748_v45 = vpack.c.bf16 %v287_v40, %v279_v39  ;;  %v278_v46 = vld [vmem:[#allocation5 + $0x700] sm:$0xff]  ;;  %v280_v48 = vld [vmem:[#allocation5 + $0x710] sm:$0xff] }
  0x5e   :  { %v286_v47 = vld [vmem:[#allocation5 + $0x740] sm:$0xff]  ;;  %v812_v49 = vpack.c.bf16 %v289_v42, %v281_v41  ;;  %v288_v50 = vld [vmem:[#allocation5 + $0x750] sm:$0xff]  ;;  %v295_v51 = vld [vmem:[#allocation5 + $0x788] sm:$0xff] }
  0x5f   :  { %731 = vmatpush1.bf16.msra.mxu0 %v730_v58  ;;  %v303_v52 = vld [vmem:[#allocation5 + $0x7c8] sm:$0xff]  ;;  %v297_v53 = vld [vmem:[#allocation5 + $0x798] sm:$0xff]  ;;  %v750_v55 = vpack.c.bf16 %v286_v47, %v278_v46  ;;  %v814_v56 = vpack.c.bf16 %v288_v50, %v280_v48  ;;  %v294_v58 = vld [vmem:[#allocation5 + $0x780] sm:$0xff] }
  0x60   :  { %795 = vmatpush1.bf16.msra.mxu1 %v794_v59  ;;  %733 = vmatprep.subr.bf16.mxu0 %v732_v60  ;;  %v305_v54 = vld [vmem:[#allocation5 + $0x7d8] sm:$0xff]  ;;  %v752_v57 = vpack.c.bf16 %v303_v52, %v295_v51  ;;  %v302_v59 = vld [vmem:[#allocation5 + $0x7c0] sm:$0xff]  ;;  %v296_v60 = vld [vmem:[#allocation5 + $0x790] sm:$0xff] }
  0x61   :  { %797 = vmatprep.subr.bf16.mxu1 %v796_v0  ;;  %v816_v61 = vpack.c.bf16 %v305_v54, %v297_v53  ;;  %v304_v62 = vld [vmem:[#allocation5 + $0x7d0] sm:$0xff]  ;;  %v59_v63 = vld [vmem:[#allocation5 + $0x28] sm:$0xff]  ;;  %v61_v1 = vld [vmem:[#allocation5 + $0x38] sm:$0xff]  ;;  %v754_v3 = vpack.c.bf16 %v302_v59, %v294_v58 }
  0x62   :  { %v67_v0 = vld [vmem:[#allocation5 + $0x68] sm:$0xff]  ;;  %v69_v2 = vld [vmem:[#allocation5 + $0x78] sm:$0xff]  ;;  %v818_v4 = vpack.c.bf16 %v304_v62, %v296_v60  ;;  %v66_v7 = vld [vmem:[#allocation5 + $0x60] sm:$0xff] }
  0x63   :  { %735 = vmatpush1.bf16.msra.mxu0 %v734_v6  ;;  %v820_v5 = vpack.c.bf16 %v67_v0, %v59_v63  ;;  %v58_v6 = vld [vmem:[#allocation5 + $0x20] sm:$0xff]  ;;  %v68_v10 = vld [vmem:[#allocation5 + $0x70] sm:$0xff]  ;;  %v75_v11 = vld [vmem:[#allocation5 + $0xa8] sm:$0xff] }
  0x64   :  { %799 = vmatpush1.bf16.msra.mxu1 %v798_v8  ;;  %737 = vmatprep.subr.bf16.mxu0 %v736_v9  ;;  %v60_v8 = vld [vmem:[#allocation5 + $0x30] sm:$0xff]  ;;  %v884_v9 = vpack.c.bf16 %v69_v2, %v61_v1  ;;  %v83_v12 = vld [vmem:[#allocation5 + $0xe8] sm:$0xff]  ;;  %v85_v14 = vld [vmem:[#allocation5 + $0xf8] sm:$0xff]  ;;  %v822_v17 = vpack.c.bf16 %v66_v7, %v58_v6 }
  0x65   :  { %801 = vmatprep.subr.bf16.mxu1 %v800_v13  ;;  %v77_v13 = vld [vmem:[#allocation5 + $0xb8] sm:$0xff]  ;;  %v1116_v15 = vld [vmem:[#allocation2] sm:$0xff]  ;;  %v886_v18 = vpack.c.bf16 %v68_v10, %v60_v8  ;;  %v99_v26 = vld [vmem:[#allocation5 + $0x168] sm:$0xff] }
  0x66   :  { %v76_v22 = vld [vmem:[#allocation5 + $0xb0] sm:$0xff]  ;;  %v888_v23 = vpack.c.bf16 %v85_v14, %v77_v13  ;;  %v93_v27 = vld [vmem:[#allocation5 + $0x138] sm:$0xff]  ;;  %v115_v38 = vld [vmem:[#allocation5 + $0x1e8] sm:$0xff] }
  0x67   :  { %739 = vmatpush1.bf16.msra.mxu0 %v738_v19  ;;  %v824_v19 = vpack.c.bf16 %v83_v12, %v75_v11  ;;  %v84_v24 = vld [vmem:[#allocation5 + $0xf0] sm:$0xff]  ;;  %v101_v28 = vld [vmem:[#allocation5 + $0x178] sm:$0xff]  ;;  %v131_v50 = vld [vmem:[#allocation5 + $0x268] sm:$0xff] }
  0x68   :  { %803 = vmatpush1.bf16.msra.mxu1 %v802_v20  ;;  %741 = vmatprep.subr.bf16.mxu0 %v740_v21  ;;  %v74_v20 = vld [vmem:[#allocation5 + $0xa0] sm:$0xff]  ;;  %v890_v30 = vpack.c.bf16 %v84_v24, %v76_v22  ;;  %v92_v34 = vld [vmem:[#allocation5 + $0x130] sm:$0xff]  ;;  %v892_v35 = vpack.c.bf16 %v101_v28, %v93_v27  ;;  %v109_v39 = vld [vmem:[#allocation5 + $0x1b8] sm:$0xff] }
  0x69   :  { %805 = vmatprep.subr.bf16.mxu1 %v804_v25  ;;  %v82_v21 = vld [vmem:[#allocation5 + $0xe0] sm:$0xff]  ;;  %v91_v25 = vld [vmem:[#allocation5 + $0x128] sm:$0xff]  ;;  %v100_v36 = vld [vmem:[#allocation5 + $0x170] sm:$0xff] }
  0x6a   :  { %v826_v29 = vpack.c.bf16 %v82_v21, %v74_v20  ;;  %v117_v40 = vld [vmem:[#allocation5 + $0x1f8] sm:$0xff]  ;;  %v894_v42 = vpack.c.bf16 %v100_v36, %v92_v34  ;;  %v108_v46 = vld [vmem:[#allocation5 + $0x1b0] sm:$0xff]  ;;  %v139_v60 = vld [vmem:[#allocation5 + $0x2a8] sm:$0xff] }
  0x6b   :  { %743 = vmatpush1.bf16.msra.mxu0 %v742_v31  ;;  %v828_v31 = vpack.c.bf16 %v99_v26, %v91_v25  ;;  %v896_v47 = vpack.c.bf16 %v117_v40, %v109_v39  ;;  %v116_v48 = vld [vmem:[#allocation5 + $0x1f0] sm:$0xff]  ;;  %v125_v51 = vld [vmem:[#allocation5 + $0x238] sm:$0xff]  ;;  %v155_v8 = vld [vmem:[#allocation5 + $0x328] sm:$0xff] }
  0x6c   :  { %807 = vmatpush1.bf16.msra.mxu1 %v806_v32  ;;  %745 = vmatprep.subr.bf16.mxu0 %v744_v33  ;;  %v90_v32 = vld [vmem:[#allocation5 + $0x120] sm:$0xff]  ;;  %v133_v52 = vld [vmem:[#allocation5 + $0x278] sm:$0xff]  ;;  %v132_v59 = vld [vmem:[#allocation5 + $0x270] sm:$0xff] }
  0x6d   :  { %809 = vmatprep.subr.bf16.mxu1 %v808_v37  ;;  %v98_v33 = vld [vmem:[#allocation5 + $0x160] sm:$0xff]  ;;  %v107_v37 = vld [vmem:[#allocation5 + $0x1a8] sm:$0xff]  ;;  %v900_v58 = vpack.c.bf16 %v133_v52, %v125_v51  ;;  %v141_v62 = vld [vmem:[#allocation5 + $0x2b8] sm:$0xff] }
  0x6e   :  { %v830_v41 = vpack.c.bf16 %v98_v33, %v90_v32  ;;  %v149_v63 = vld [vmem:[#allocation5 + $0x2f8] sm:$0xff]  ;;  %v148_v7 = vld [vmem:[#allocation5 + $0x2f0] sm:$0xff]  ;;  %v171_v22 = vld [vmem:[#allocation5 + $0x3a8] sm:$0xff] }
  0x6f   :  { %747 = vmatpush1.bf16.msra.mxu0 %v746_v43  ;;  %v832_v43 = vpack.c.bf16 %v115_v38, %v107_v37  ;;  %v904_v6 = vpack.c.bf16 %v149_v63, %v141_v62  ;;  %v157_v10 = vld [vmem:[#allocation5 + $0x338] sm:$0xff]  ;;  %v164_v21 = vld [vmem:[#allocation5 + $0x370] sm:$0xff]  ;;  %v187_v34 = vld [vmem:[#allocation5 + $0x428] sm:$0xff] }
  0x70   :  { %811 = vmatpush1.bf16.msra.mxu1 %v810_v44  ;;  %749 = vmatprep.subr.bf16.mxu0 %v748_v45  ;;  %v106_v44 = vld [vmem:[#allocation5 + $0x1a0] sm:$0xff]  ;;  %v165_v11 = vld [vmem:[#allocation5 + $0x378] sm:$0xff]  ;;  %v180_v33 = vld [vmem:[#allocation5 + $0x3f0] sm:$0xff] }
  0x71   :  { %813 = vmatprep.subr.bf16.mxu1 %v812_v49  ;;  %v114_v45 = vld [vmem:[#allocation5 + $0x1e0] sm:$0xff]  ;;  %v123_v49 = vld [vmem:[#allocation5 + $0x228] sm:$0xff]  ;;  %v908_v20 = vpack.c.bf16 %v165_v11, %v157_v10  ;;  %v173_v24 = vld [vmem:[#allocation5 + $0x3b8] sm:$0xff] }
  0x72   :  { %v834_v53 = vpack.c.bf16 %v114_v45, %v106_v44  ;;  %v836_v54 = vpack.c.bf16 %v131_v50, %v123_v49  ;;  %v181_v25 = vld [vmem:[#allocation5 + $0x3f8] sm:$0xff]  ;;  %v196_v45 = vld [vmem:[#allocation5 + $0x470] sm:$0xff] }
  0x73   :  { %751 = vmatpush1.bf16.msra.mxu0 %v750_v55  ;;  %v122_v55 = vld [vmem:[#allocation5 + $0x220] sm:$0xff]  ;;  %v912_v32 = vpack.c.bf16 %v181_v25, %v173_v24  ;;  %v189_v36 = vld [vmem:[#allocation5 + $0x438] sm:$0xff] }
  0x74   :  { %815 = vmatpush1.bf16.msra.mxu1 %v814_v56  ;;  %753 = vmatprep.subr.bf16.mxu0 %v752_v57  ;;  %v130_v56 = vld [vmem:[#allocation5 + $0x260] sm:$0xff]  ;;  %v124_v57 = vld [vmem:[#allocation5 + $0x230] sm:$0xff]  ;;  %v197_v37 = vld [vmem:[#allocation5 + $0x478] sm:$0xff] }
  0x75   :  { %817 = vmatprep.subr.bf16.mxu1 %v816_v61  ;;  %v147_v61 = vld [vmem:[#allocation5 + $0x2e8] sm:$0xff]  ;;  %v838_v0 = vpack.c.bf16 %v130_v56, %v122_v55  ;;  %v902_v1 = vpack.c.bf16 %v132_v59, %v124_v57  ;;  %v916_v44 = vpack.c.bf16 %v197_v37, %v189_v36  ;;  %v213_v49 = vld [vmem:[#allocation5 + $0x4f8] sm:$0xff]  ;;  %v212_v56 = vld [vmem:[#allocation5 + $0x4f0] sm:$0xff] }
  0x76   :  { %v840_v2 = vpack.c.bf16 %v147_v61, %v139_v60  ;;  %v219_v57 = vld [vmem:[#allocation5 + $0x528] sm:$0xff]  ;;  %v221_v59 = vld [vmem:[#allocation5 + $0x538] sm:$0xff] }
  0x77   :  { %755 = vmatpush1.bf16.msra.mxu0 %v754_v3  ;;  %v138_v3 = vld [vmem:[#allocation5 + $0x2a0] sm:$0xff]  ;;  %v229_v60 = vld [vmem:[#allocation5 + $0x578] sm:$0xff] }
  0x78   :  { %819 = vmatpush1.bf16.msra.mxu1 %v818_v4  ;;  %821 = vmatprep.subr.bf16.mxu0 %v820_v5  ;;  %v146_v4 = vld [vmem:[#allocation5 + $0x2e0] sm:$0xff]  ;;  %v140_v5 = vld [vmem:[#allocation5 + $0x2b0] sm:$0xff] }
  0x79   :  { %885 = vmatprep.subr.bf16.mxu1 %v884_v9  ;;  %v163_v9 = vld [vmem:[#allocation5 + $0x368] sm:$0xff]  ;;  %v842_v12 = vpack.c.bf16 %v146_v4, %v138_v3  ;;  %v906_v13 = vpack.c.bf16 %v148_v7, %v140_v5  ;;  %v924_v3 = vpack.c.bf16 %v229_v60, %v221_v59  ;;  %v228_v4 = vld [vmem:[#allocation5 + $0x570] sm:$0xff]  ;;  %v237_v7 = vld [vmem:[#allocation5 + $0x5b8] sm:$0xff] }
  0x7a   :  { %375 = vmatmul.mubr.f32.vlgmr.msra.gmra.mrb[0].mxu0 %v1116_v15  ;;  %v844_v14 = vpack.c.bf16 %v163_v9, %v155_v8  ;;  %v235_v5 = vld [vmem:[#allocation5 + $0x5a8] sm:$0xff]  ;;  %v245_v8 = vld [vmem:[#allocation5 + $0x5f8] sm:$0xff] }
  0x7b   :  { %446 = vmatmul.mubr.f32.vlgmr.msra.gmra.mrb[0].mxu1 %v1116_v15  ;;  %823 = vmatpush1.bf16.msra.mxu0 %v822_v17  ;;  %v154_v17 = vld [vmem:[#allocation5 + $0x320] sm:$0xff] }
  0x7c   :  { %887 = vmatpush1.bf16.msra.mxu1 %v886_v18  ;;  %825 = vmatprep.subr.bf16.mxu0 %v824_v19  ;;  %v162_v18 = vld [vmem:[#allocation5 + $0x360] sm:$0xff]  ;;  %v156_v19 = vld [vmem:[#allocation5 + $0x330] sm:$0xff] }
  0x7d   :  { %889 = vmatprep.subr.bf16.mxu1 %v888_v23  ;;  %516 = vmatprep.mubr.f32.mxu0 %v1112_v16  ;;  %v179_v23 = vld [vmem:[#allocation5 + $0x3e8] sm:$0xff]  ;;  %v846_v26 = vpack.c.bf16 %v162_v18, %v154_v17  ;;  %v910_v27 = vpack.c.bf16 %v164_v21, %v156_v19  ;;  %v928_v17 = vpack.c.bf16 %v245_v8, %v237_v7  ;;  %v244_v18 = vld [vmem:[#allocation5 + $0x5f0] sm:$0xff]  ;;  %v253_v21 = vld [vmem:[#allocation5 + $0x638] sm:$0xff] }
  0x7e   :  { %587 = vmatprep.mubr.f32.mxu1 %v1112_v16  ;;  %v898_v16 = vpack.c.bf16 %v116_v48, %v108_v46  ;;  %v848_v28 = vpack.c.bf16 %v179_v23, %v171_v22  ;;  %v203_v46 = vld [vmem:[#allocation5 + $0x4a8] sm:$0xff]  ;;  %v205_v48 = vld [vmem:[#allocation5 + $0x4b8] sm:$0xff] }
  0x7f   :  { %827 = vmatpush1.bf16.msra.mxu0 %v826_v29  ;;  %v170_v29 = vld [vmem:[#allocation5 + $0x3a0] sm:$0xff]  ;;  %v920_v55 = vpack.c.bf16 %v213_v49, %v205_v48  ;;  %v251_v19 = vld [vmem:[#allocation5 + $0x628] sm:$0xff]  ;;  %v261_v22 = vld [vmem:[#allocation5 + $0x678] sm:$0xff] }
  0x80   :  { %891 = vmatpush1.bf16.msra.mxu1 %v890_v30  ;;  %829 = vmatprep.subr.bf16.mxu0 %v828_v31  ;;  %v178_v30 = vld [vmem:[#allocation5 + $0x3e0] sm:$0xff]  ;;  %v172_v31 = vld [vmem:[#allocation5 + $0x3b0] sm:$0xff] }
  0x81   :  { %893 = vmatprep.subr.bf16.mxu1 %v892_v35  ;;  %v195_v35 = vld [vmem:[#allocation5 + $0x468] sm:$0xff]  ;;  %v850_v38 = vpack.c.bf16 %v178_v30, %v170_v29  ;;  %v914_v39 = vpack.c.bf16 %v180_v33, %v172_v31  ;;  %v932_v29 = vpack.c.bf16 %v261_v22, %v253_v21  ;;  %v260_v30 = vld [vmem:[#allocation5 + $0x670] sm:$0xff]  ;;  %v269_v33 = vld [vmem:[#allocation5 + $0x6b8] sm:$0xff] }
  0x82   :  { %v852_v40 = vpack.c.bf16 %v195_v35, %v187_v34  ;;  %v267_v31 = vld [vmem:[#allocation5 + $0x6a8] sm:$0xff]  ;;  %v277_v34 = vld [vmem:[#allocation5 + $0x6f8] sm:$0xff] }
  0x83   :  { %831 = vmatpush1.bf16.msra.mxu0 %v830_v41  ;;  %v186_v41 = vld [vmem:[#allocation5 + $0x420] sm:$0xff] }
  0x84   :  { %895 = vmatpush1.bf16.msra.mxu1 %v894_v42  ;;  %833 = vmatprep.subr.bf16.mxu0 %v832_v43  ;;  %v194_v42 = vld [vmem:[#allocation5 + $0x460] sm:$0xff]  ;;  %v188_v43 = vld [vmem:[#allocation5 + $0x430] sm:$0xff] }
  0x85   :  { %897 = vmatprep.subr.bf16.mxu1 %v896_v47  ;;  %v211_v47 = vld [vmem:[#allocation5 + $0x4e8] sm:$0xff]  ;;  %v854_v50 = vpack.c.bf16 %v194_v42, %v186_v41  ;;  %v918_v51 = vpack.c.bf16 %v196_v45, %v188_v43  ;;  %v936_v41 = vpack.c.bf16 %v277_v34, %v269_v33  ;;  %v276_v42 = vld [vmem:[#allocation5 + $0x6f0] sm:$0xff]  ;;  %v285_v45 = vld [vmem:[#allocation5 + $0x738] sm:$0xff] }
  0x86   :  { %v856_v52 = vpack.c.bf16 %v211_v47, %v203_v46  ;;  %v283_v43 = vld [vmem:[#allocation5 + $0x728] sm:$0xff]  ;;  %v293_v46 = vld [vmem:[#allocation5 + $0x778] sm:$0xff] }
  0x87   :  { %835 = vmatpush1.bf16.msra.mxu0 %v834_v53  ;;  %v202_v53 = vld [vmem:[#allocation5 + $0x4a0] sm:$0xff] }
  0x88   :  { %899 = vmatpush1.bf16.msra.mxu1 %v898_v16  ;;  %837 = vmatprep.subr.bf16.mxu0 %v836_v54  ;;  %v210_v16 = vld [vmem:[#allocation5 + $0x4e0] sm:$0xff]  ;;  %v204_v54 = vld [vmem:[#allocation5 + $0x4b0] sm:$0xff] }
  0x89   :  { %901 = vmatprep.subr.bf16.mxu1 %v900_v58  ;;  %v227_v58 = vld [vmem:[#allocation5 + $0x568] sm:$0xff]  ;;  %v858_v61 = vpack.c.bf16 %v210_v16, %v202_v53  ;;  %v922_v62 = vpack.c.bf16 %v212_v56, %v204_v54  ;;  %v940_v53 = vpack.c.bf16 %v293_v46, %v285_v45  ;;  %v292_v16 = vld [vmem:[#allocation5 + $0x770] sm:$0xff]  ;;  %v301_v56 = vld [vmem:[#allocation5 + $0x7b8] sm:$0xff] }
  0x8a   :  { %v860_v63 = vpack.c.bf16 %v227_v58, %v219_v57  ;;  %v299_v54 = vld [vmem:[#allocation5 + $0x7a8] sm:$0xff]  ;;  %v309_v57 = vld [vmem:[#allocation5 + $0x7f8] sm:$0xff] }
  0x8b   :  { %839 = vmatpush1.bf16.msra.mxu0 %v838_v0  ;;  %v218_v0 = vld [vmem:[#allocation5 + $0x520] sm:$0xff] }
  0x8c   :  { %903 = vmatpush1.bf16.msra.mxu1 %v902_v1  ;;  %841 = vmatprep.subr.bf16.mxu0 %v840_v2  ;;  %v226_v1 = vld [vmem:[#allocation5 + $0x560] sm:$0xff]  ;;  %v220_v2 = vld [vmem:[#allocation5 + $0x530] sm:$0xff] }
  0x8d   :  { %905 = vmatprep.subr.bf16.mxu1 %v904_v6  ;;  %v243_v6 = vld [vmem:[#allocation5 + $0x5e8] sm:$0xff]  ;;  %v862_v9 = vpack.c.bf16 %v226_v1, %v218_v0  ;;  %v926_v10 = vpack.c.bf16 %v228_v4, %v220_v2  ;;  %v300_v0 = vld [vmem:[#allocation5 + $0x7b0] sm:$0xff]  ;;  %v596_v4 = vlaneseq }
  0x8e   :  { %v864_v11 = vpack.c.bf16 %v243_v6, %v235_v5  ;;  %v308_v1 = vld [vmem:[#allocation5 + $0x7f0] sm:$0xff]  ;;  %v1054_v6 = vmov 1983009808  }
  0x8f   :  { %843 = vmatpush1.bf16.msra.mxu0 %v842_v12  ;;  %v234_v12 = vld [vmem:[#allocation5 + $0x5a0] sm:$0xff]  ;;  %v597_v5 = vshrl.u32 %v596_v4, 7  ;;  %v639_v7 = vunpack.c.l.s4 %v1054_v6 }
  0x90   :  { %907 = vmatpush1.bf16.msra.mxu1 %v906_v13  ;;  %845 = vmatprep.subr.bf16.mxu0 %v844_v14  ;;  %v242_v13 = vld [vmem:[#allocation5 + $0x5e0] sm:$0xff]  ;;  %v236_v14 = vld [vmem:[#allocation5 + $0x5b0] sm:$0xff] }
  0x91   :  { %909 = vmatprep.subr.bf16.mxu1 %v908_v20  ;;  %v259_v20 = vld [vmem:[#allocation5 + $0x668] sm:$0xff]  ;;  %v866_v23 = vpack.c.bf16 %v242_v13, %v234_v12  ;;  %v930_v24 = vpack.c.bf16 %v244_v18, %v236_v14  ;;  %v598_v8 = vsub.s32 0, %v597_v5 }
  0x92   :  { %v868_v25 = vpack.c.bf16 %v259_v20, %v251_v19 }
  0x93   :  { %847 = vmatpush1.bf16.msra.mxu0 %v846_v26  ;;  %v250_v26 = vld [vmem:[#allocation5 + $0x620] sm:$0xff] }
  0x94   :  { %911 = vmatpush1.bf16.msra.mxu1 %v910_v27  ;;  %849 = vmatprep.subr.bf16.mxu0 %v848_v28  ;;  %v258_v27 = vld [vmem:[#allocation5 + $0x660] sm:$0xff]  ;;  %v252_v28 = vld [vmem:[#allocation5 + $0x630] sm:$0xff] }
  0x95   :  { %913 = vmatprep.subr.bf16.mxu1 %v912_v32  ;;  %v275_v32 = vld [vmem:[#allocation5 + $0x6e8] sm:$0xff]  ;;  %v870_v35 = vpack.c.bf16 %v258_v27, %v250_v26  ;;  %v934_v36 = vpack.c.bf16 %v260_v30, %v252_v28 }
  0x96   :  { %v872_v37 = vpack.c.bf16 %v275_v32, %v267_v31 }
  0x97   :  { %851 = vmatpush1.bf16.msra.mxu0 %v850_v38  ;;  %v266_v38 = vld [vmem:[#allocation5 + $0x6a0] sm:$0xff] }
  0x98   :  { %915 = vmatpush1.bf16.msra.mxu1 %v914_v39  ;;  %853 = vmatprep.subr.bf16.mxu0 %v852_v40  ;;  %v274_v39 = vld [vmem:[#allocation5 + $0x6e0] sm:$0xff]  ;;  %v268_v40 = vld [vmem:[#allocation5 + $0x6b0] sm:$0xff] }
  0x99   :  { %917 = vmatprep.subr.bf16.mxu1 %v916_v44  ;;  %v291_v44 = vld [vmem:[#allocation5 + $0x768] sm:$0xff]  ;;  %v874_v47 = vpack.c.bf16 %v274_v39, %v266_v38  ;;  %v938_v48 = vpack.c.bf16 %v276_v42, %v268_v40 }
  0x9a   :  { %v876_v49 = vpack.c.bf16 %v291_v44, %v283_v43  ;;  %v595_v39 = vld [vmem:[#allocation7 + $0x8] sm:$0xff] }
  0x9b   :  { %855 = vmatpush1.bf16.msra.mxu0 %v854_v50  ;;  %v282_v50 = vld [vmem:[#allocation5 + $0x720] sm:$0xff] }
  0x9c   :  { %919 = vmatpush1.bf16.msra.mxu1 %v918_v51  ;;  %857 = vmatprep.subr.bf16.mxu0 %v856_v52  ;;  %v290_v51 = vld [vmem:[#allocation5 + $0x760] sm:$0xff]  ;;  %v284_v52 = vld [vmem:[#allocation5 + $0x730] sm:$0xff] }
  0x9d   :  { %921 = vmatprep.subr.bf16.mxu1 %v920_v55  ;;  %v307_v55 = vld [vmem:[#allocation5 + $0x7e8] sm:$0xff]  ;;  %v878_v58 = vpack.c.bf16 %v290_v51, %v282_v50  ;;  %v942_v59 = vpack.c.bf16 %v292_v16, %v284_v52 }
  0x9e   :  { %v880_v60 = vpack.c.bf16 %v307_v55, %v299_v54 }
  0x9f   :  { %859 = vmatpush1.bf16.msra.mxu0 %v858_v61  ;;  %v298_v61 = vld [vmem:[#allocation5 + $0x7a0] sm:$0xff] }
  0xa0   :  { %923 = vmatpush1.bf16.msra.mxu1 %v922_v62  ;;  %861 = vmatprep.subr.bf16.mxu0 %v860_v63  ;;  %v306_v62 = vld [vmem:[#allocation5 + $0x7e0] sm:$0xff]  ;;  %v944_v63 = vpack.c.bf16 %v309_v57, %v301_v56 }
  0xa1   :  { %925 = vmatprep.subr.bf16.mxu1 %v924_v3  ;;  %v882_v2 = vpack.c.bf16 %v306_v62, %v298_v61  ;;  %v946_v3 = vpack.c.bf16 %v308_v1, %v300_v0 }
  0xa3   :  { %863 = vmatpush1.bf16.msra.mxu0 %v862_v9  ;;  %v640_v9 = vunpack.c.0.s8 %v639_v7 }
  0xa4   :  { %927 = vmatpush1.bf16.msra.mxu1 %v926_v10  ;;  %865 = vmatprep.subr.bf16.mxu0 %v864_v11 }
  0xa5   :  { %929 = vmatprep.subr.bf16.mxu1 %v928_v17  ;;  %v643_v18 = vsub.s32 %v640_v9, %v597_v5 }
  0xa7   :  { %867 = vmatpush1.bf16.msra.mxu0 %v866_v23 }
  0xa8   :  { %931 = vmatpush1.bf16.msra.mxu1 %v930_v24  ;;  %869 = vmatprep.subr.bf16.mxu0 %v868_v25 }
  0xa9   :  { %933 = vmatprep.subr.bf16.mxu1 %v932_v29 }
  0xab   :  { %871 = vmatpush1.bf16.msra.mxu0 %v870_v35 }
  0xac   :  { %935 = vmatpush1.bf16.msra.mxu1 %v934_v36  ;;  %873 = vmatprep.subr.bf16.mxu0 %v872_v37 }
  0xad   :  { %937 = vmatprep.subr.bf16.mxu1 %v936_v41 }
  0xaf   :  { %875 = vmatpush1.bf16.msra.mxu0 %v874_v47 }
  0xb0   :  { %939 = vmatpush1.bf16.msra.mxu1 %v938_v48  ;;  %877 = vmatprep.subr.bf16.mxu0 %v876_v49 }
  0xb1   :  { %941 = vmatprep.subr.bf16.mxu1 %v940_v53 }
  0xb3   :  { %879 = vmatpush1.bf16.msra.mxu0 %v878_v58 }
  0xb4   :  { %943 = vmatpush1.bf16.msra.mxu1 %v942_v59  ;;  %881 = vmatprep.subr.bf16.mxu0 %v880_v60 }
  0xb5   :  { %945 = vmatprep.subr.bf16.mxu1 %v944_v63 }
  0xb7   :  { %883 = vmatpush1.bf16.msra.mxu0 %v882_v2 }
  0xb8   :  { %947 = vmatpush1.bf16.msra.mxu1 %v946_v3 }
  0xba   :  { %517 = vmatmul.mubr.f32.vlgmr.msra.gmra.mrb[2].mxu0 %v1116_v15 }
  0xbb   :  { %588 = vmatmul.mubr.f32.vlgmr.msra.gmra.mrb[2].mxu1 %v1116_v15  ;;  %v594_v15 = vld [vmem:[#allocation7] sm:$0xff] }
 0x14d   :  { %v376_v10 = vpop.f32.mrb[0].mxu0 }
 0x14e   :  { %v599_v11 = vrot.slane %v376_v10, %v598_v8  ;;  %v447_v12 = vpop.f32.mrb[0].mxu1  ;;  %v378_v13 = vpop.f32.mrb[1].mxu0 }
 0x14f   :  { %v607_v14 = vrot.slane %v447_v12, %v598_v8  ;;  %v603_v17 = vrot.slane %v378_v13, %v598_v8  ;;  %v449_v19 = vpop.f32.mrb[1].mxu1 }
 0x150   :  { %v611_v20 = vrot.slane %v449_v19, %v598_v8 }
 0x151   :  { %v636_v21 = vcombine.low %v599_v11, %v603_v17 }
 0x152   :  { %v637_v22 = vcombine.low %v607_v14, %v611_v20 }
 0x153   :  { %v644_v23 = vrot.slane %v636_v21, %v643_v18 }
 0x154   :  { %v651_v24 = vrot.slane %v637_v22, %v643_v18 }
 0x156   :  { %v652_v25 = vcombine.low %v644_v23, %v651_v24 }
 0x158   :  { %v672_v26 = vmul.f32 %v652_v25, %v594_v15 }
 0x15a   :  { %674 = vst [vmem:[#allocation8] sm:$0xff] %v672_v26 }
 0x18d   :  { %v518_v27 = vpop.f32.mrb[2].mxu0 }
 0x18e   :  { %v615_v28 = vrot.slane %v518_v27, %v598_v8  ;;  %v589_v29 = vpop.f32.mrb[2].mxu1  ;;  %v520_v30 = vpop.f32.mrb[3].mxu0 }
 0x18f   :  { %v623_v31 = vrot.slane %v589_v29, %v598_v8  ;;  %v619_v32 = vrot.slane %v520_v30, %v598_v8  ;;  %v591_v33 = vpop.f32.mrb[3].mxu1 }
 0x190   :  { %v627_v34 = vrot.slane %v591_v33, %v598_v8 }
 0x191   :  { %v653_v35 = vcombine.low %v615_v28, %v619_v32 }
 0x192   :  { %v654_v36 = vcombine.low %v623_v31, %v627_v34 }
 0x193   :  { %v661_v37 = vrot.slane %v653_v35, %v643_v18 }
 0x194   :  { %v668_v38 = vrot.slane %v654_v36, %v643_v18 }
 0x196   :  { %v669_v40 = vcombine.low %v661_v37, %v668_v38 }
 0x198   :  { %v673_v41 = vmul.f32 %v669_v40, %v595_v39 }
 0x19a   :  { %675 = vst [vmem:[#allocation8 + $0x8] sm:$0xff] %v673_v41 }
 0x19b   :  { %1032 = shalt.err (!%p1029_p0)
}
 0x19c   :  { %s1033_s25 = scalar_lea.hbm %s1139_s3, 256 }
 0x19d   :  { %p1034_p1 = scmp.ne.s32.totalorder %s1139_s3, %s1033_s25  ;;  %p1037_p2 = scmp.lt.u32.totalorder %s1033_s25, %s1139_s3 }
 0x19f   :  { %p1039_p3 = pnand %p1037_p2, %p1034_p1 }
 0x1a1   :  { %1042 = shalt.err (!%p1039_p3)
}
 0x1a2   :  { %685 = dma.vmem_to_hbm [thread:$0]  %s683_s21, 256, %s1139_s3, [#allocation4]  }
 0x1a3   :  { %1047 = dma.done.wait [#allocation4], 256  }
 0x1a4   :  { %1048 = vsyncadd [#allocation4], 4294967040 }
 0x1a5   :  { %689 = vsyncpa [#allocation3], 1 }
 0x1a6   :  { %690 = vsyncpa [#allocation6], 1 }
 0x1a7   :  { %691 = vsyncpa [#allocation4], 1 }

</bundles_post_ra>
